<compile_context>
chip_gen: v6e
topology: v6e:2x2x1
jax: 0.10.0
libtpu: 0.0.40
codegen_flags: <defaults>
</compile_context>

<pallas_src>
import jax
import jax.numpy as jnp
from jax import lax
from jax.experimental import pallas as pl
from jax.experimental.pallas import tpu as pltpu


# ---------------------------------------------------------------------------
# Tiling helpers
# ---------------------------------------------------------------------------
def _round_up(n, m):
    return ((n + m - 1) // m) * m


def _pad_dim(d):
    """Pad a feature dim: to 128/256 for small dims, to a multiple of 256 past that
    (so the tile picker never collapses to 128 for shapes like 300/600)."""
    if d <= 256:
        return _round_up(max(d, 128), 128)
    return _round_up(d, 256)


def _pick_tile(dim_p, cap=512):
    """Largest of (512, 256, 128) <= cap that divides dim_p (dim_p is built by _pad_dim)."""
    for cand in (512, 256, 128):
        if cand <= cap and dim_p % cand == 0:
            return cand
    return 128


# ---------------------------------------------------------------------------
# Kernels
# ---------------------------------------------------------------------------
def _train_kernel(x_ref, eps_in_ref, mu_w_ref, sig_w_ref, eps_out_ref, bias_ref, o_ref):
    # grid = (m, i, k): m over batch tiles, i over out_f tiles, k over in_f (reduction).
    k = pl.program_id(2)

    @pl.when(k == 0)
    def _():
        o_ref[...] = jnp.zeros_like(o_ref)      # f32 output block doubles as accumulator

    tk = mu_w_ref.shape[1]
    start = pl.multiple_of(k * tk, 128)
    x_blk = x_ref[:, pl.ds(start, tk)]          # (TM, TK) f32 slice of the resident x
    wdt = mu_w_ref.dtype
    dn = (((1,), (1,)), ((), ()))               # contract x dim 1 with w dim 1 (w is (TN, TK))

    # Algebraic split of the factorized noise: two MXU matmuls instead of building the
    # (TN, TK) noisy-weight tile on the VPU.
    acc = lax.dot_general(x_blk.astype(wdt), mu_w_ref[...], dn,
                          preferred_element_type=jnp.float32)
    xe = (x_blk * eps_in_ref[:, pl.ds(start, tk)]).astype(wdt)
    acc += eps_out_ref[...] * lax.dot_general(xe, sig_w_ref[...], dn,
                                              preferred_element_type=jnp.float32)
    o_ref[...] += acc

    @pl.when(k == pl.num_programs(2) - 1)
    def _():
        o_ref[...] += bias_ref[...]             # bias precomputed as mu_b + sig_b*eps_out


def _eval_kernel(x_ref, mu_w_ref, bias_ref, o_ref):
    k = pl.program_id(2)

    @pl.when(k == 0)
    def _():
        o_ref[...] = jnp.zeros_like(o_ref)

    tk = mu_w_ref.shape[1]
    start = pl.multiple_of(k * tk, 128)
    x_blk = x_ref[:, pl.ds(start, tk)].astype(mu_w_ref.dtype)
    o_ref[...] += lax.dot_general(x_blk, mu_w_ref[...], (((1,), (1,)), ((), ())),
                                  preferred_element_type=jnp.float32)

    @pl.when(k == pl.num_programs(2) - 1)
    def _():
        o_ref[...] += bias_ref[...]


# ---------------------------------------------------------------------------
# Parameter preparation (done ONCE, not per forward call)
# ---------------------------------------------------------------------------
def prepare_noisy_linear(mu_w, sig_w, mu_b, sig_b, eps_out, eps_in,
                         weight_dtype=jnp.bfloat16):
    """Pad + cast the parameters once. bf16 weight streaming halves HBM traffic on the
    weight-bound path (accumulation stays f32 in the kernel); pass weight_dtype=jnp.float32
    for bit-faithful numerics. Re-run after the equivalent of reset()/reset_parameters()."""
    out_f, in_f = mu_w.shape
    in_p, out_p = _pad_dim(in_f), _pad_dim(out_f)

    def pad_mat(a):
        if a.shape != (out_p, in_p):
            a = jnp.pad(a, ((0, out_p - out_f), (0, in_p - in_f)))
        return a.astype(weight_dtype)

    def pad_row(v, n):
        if v.shape[0] != n:
            v = jnp.pad(v, (0, n - v.shape[0]))
        return v.reshape(1, n).astype(jnp.float32)

    return dict(
        in_f=in_f, out_f=out_f, in_p=in_p, out_p=out_p,
        mu_w=pad_mat(mu_w), sig_w=pad_mat(sig_w),
        eps_in=pad_row(eps_in, in_p),
        eps_out=pad_row(eps_out, out_p),
        bias_train=pad_row(mu_b + sig_b * eps_out, out_p),   # noisy bias precomputed (O(out_f))
        bias_eval=pad_row(mu_b, out_p),
    )


# ---------------------------------------------------------------------------
# Forward
# ---------------------------------------------------------------------------
def noisy_linear(x, params, *, training=True):
    """x: (B, in_f) -> (B, out_f), matching F.linear(x, W, b) of the PyTorch module."""
    B, in_f = x.shape
    assert in_f == params["in_f"], "input feature dim mismatch"
    in_p, out_p, out_f = params["in_p"], params["out_p"], params["out_f"]

    # Batch tiling: small batches stay as a single resident tile; large batches get an
    # M grid axis so x / out blocks stay within VMEM budget.
    if B <= 256:
        B_p = _round_up(B, 8)
        TM = B_p
    else:
        B_p = _round_up(B, 256)
        TM = 256

    TK = _pick_tile(in_p)
    TN = _pick_tile(out_p)
    if out_p // TN < 2 and TN >= 256:
        TN //= 2            # guarantee >=2 'parallel' out-tiles for v7x's two TensorCores

    x_p = x.astype(jnp.float32)
    if (B_p, in_p) != x.shape:
        x_p = jnp.pad(x_p, ((0, B_p - B), (0, in_p - in_f)))

    grid = (B_p // TM, out_p // TN, in_p // TK)

    x_spec = pl.BlockSpec((TM, in_p), lambda m, i, k: (m, 0))     # resident across (i, k)
    w_spec = pl.BlockSpec((TN, TK), lambda m, i, k: (i, k))
    inrow_spec = pl.BlockSpec((1, in_p), lambda m, i, k: (0, 0))
    outrow_spec = pl.BlockSpec((1, TN), lambda m, i, k: (0, i))
    out_spec = pl.BlockSpec((TM, TN), lambda m, i, k: (m, i))

    compiler_params = pltpu.CompilerParams(
        dimension_semantics=("parallel", "parallel", "arbitrary"),
        vmem_limit_bytes=32 * 1024 * 1024,   # <= 32 MiB: safe on v5e/v6e and v7x (64 MiB VMEM)
    )
    out_shape = jax.ShapeDtypeStruct((B_p, out_p), jnp.float32)

    if training:
        y_p = pl.pallas_call(
            _train_kernel,
            out_shape=out_shape,
            grid=grid,
            in_specs=[x_spec, inrow_spec, w_spec, w_spec, outrow_spec, outrow_spec],
            out_specs=out_spec,
            compiler_params=compiler_params,
        )(x_p, params["eps_in"], params["mu_w"], params["sig_w"],
          params["eps_out"], params["bias_train"])
    else:
        # Eval path: only mu_weight + bias are streamed (no dead inputs).
        y_p = pl.pallas_call(
            _eval_kernel,
            out_shape=out_shape,
            grid=grid,
            in_specs=[x_spec, w_spec, outrow_spec],
            out_specs=out_spec,
            compiler_params=compiler_params,
        )(x_p, params["mu_w"], params["bias_eval"])

    y = y_p[:B, :out_f]
    return y if x.dtype == jnp.float32 else y.astype(x.dtype)


# ---------------------------------------------------------------------------
# Init mirroring reset_parameters() + reset() of the PyTorch module
# ---------------------------------------------------------------------------
def _scale_noise(key, dim):
    """Factorized-Gaussian noise: sign(x) * sqrt(|x|), x ~ N(0, 1)."""
    x = jax.random.normal(key, (dim,), dtype=jnp.float32)
    return jnp.sign(x) * jnp.sqrt(jnp.abs(x))


def init_noisy_linear(key, in_f, out_f, sigma_init=2.5):
    """weight_epsilon == outer(eps_out, eps_in), bias_epsilon == eps_out (factorized)."""
    k_mu_w, k_mu_b, k_eps_in, k_eps_out = jax.random.split(key, 4)
    bound = 1.0 / (in_f ** 0.5)
    mu_w = jax.random.uniform(k_mu_w, (out_f, in_f), jnp.float32, -bound, bound)
    mu_b = jax.random.uniform(k_mu_b, (out_f,), jnp.float32, -bound, bound)
    sig_w = jnp.full((out_f, in_f), sigma_init / (in_f ** 0.5), jnp.float32)
    sig_b = jnp.full((out_f,), sigma_init / (out_f ** 0.5), jnp.float32)
    eps_in = _scale_noise(k_eps_in, in_f)
    eps_out = _scale_noise(k_eps_out, out_f)
    return mu_w, mu_b, sig_w, sig_b, eps_in, eps_out


# ---------------------------------------------------------------------------
# Self-check
# ---------------------------------------------------------------------------
def _check_case(key, B, in_f, out_f, weight_dtype, tol):
    k_params, k_x = jax.random.split(key)
    mu_w, mu_b, sig_w, sig_b, eps_in, eps_out = init_noisy_linear(k_params, in_f, out_f)
    x = jax.random.normal(k_x, (B, in_f), dtype=jnp.float32)

    params = prepare_noisy_linear(mu_w, sig_w, mu_b, sig_b, eps_out, eps_in,
                                  weight_dtype=weight_dtype)

    y_train = jax.block_until_ready(noisy_linear(x, params, training=True))
    y_eval = jax.block_until_ready(noisy_linear(x, params, training=False))

    # Reference uses the same (possibly bf16-rounded) weights the kernel streams, with
    # f32 math, so the check isolates kernel correctness from the storage-dtype choice.
    mw = params["mu_w"][:out_f, :in_f].astype(jnp.float32)
    sw = params["sig_w"][:out_f, :in_f].astype(jnp.float32)
    w_ref = mw + sw * jnp.outer(eps_out, eps_in)
    b_ref = mu_b + sig_b * eps_out
    hp = lax.Precision.HIGHEST
    ref_train = jnp.dot(x, w_ref.T, precision=hp) + b_ref
    ref_eval = jnp.dot(x, mw.T, precision=hp) + mu_b

    err_t = float(jnp.max(jnp.abs(y_train - ref_train)))
    err_e = float(jnp.max(jnp.abs(y_eval - ref_eval)))
    assert jnp.allclose(y_train, ref_train, atol=tol, rtol=tol), ("train", err_t)
    assert jnp.allclose(y_eval, ref_eval, atol=tol, rtol=tol), ("eval", err_e)


if __name__ == "__main__":
    key = jax.random.PRNGKey(0)
    k1, k2 = jax.random.split(key)

    # Small aligned case (single tile), f32 weight streaming -> tight tolerance.
    _check_case(k1, B=8, in_f=32, out_f=64, weight_dtype=jnp.float32, tol=1e-3)
    # Unaligned case: padding, multi-out-tile, multi-step K reduction, bf16 weights.
    _check_case(k2, B=5, in_f=600, out_f=300, weight_dtype=jnp.bfloat16, tol=3e-2)

    print("KERNEL_OK")
</pallas_src>

<mosaic_0001>
module attributes {stable_mosaic.version = 11 : i64} {
  func.func @_train_kernel(%arg0: i32, %arg1: i32, %arg2: i32, %arg3: memref<8x128xf32, #tpu.memory_space<vmem>>, %arg4: memref<1x128xf32, #tpu.memory_space<vmem>>, %arg5: memref<128x128xf32, #tpu.memory_space<vmem>>, %arg6: memref<128x128xf32, #tpu.memory_space<vmem>>, %arg7: memref<1x128xf32, #tpu.memory_space<vmem>>, %arg8: memref<1x128xf32, #tpu.memory_space<vmem>>, %arg9: memref<8x128xf32, #tpu.memory_space<vmem>>) attributes {dimension_semantics = [#tpu.dimension_semantics<parallel>, #tpu.dimension_semantics<parallel>, #tpu.dimension_semantics<arbitrary>], iteration_bounds = array<i64: 1, 1, 1>, scalar_prefetch = 0 : i64, scratch_operands = 0 : i64, tpu.core_type = #tpu.core_type<tc>, window_params = [{transform_indices = @transform_0, window_bounds = array<i64: 8, 128>}, {pipeline_mode = #tpu.pipeline_mode<synchronous>, transform_indices = @transform_1, window_bounds = array<i64: 1, 128>}, {transform_indices = @transform_2, window_bounds = array<i64: 128, 128>}, {transform_indices = @transform_3, window_bounds = array<i64: 128, 128>}, {transform_indices = @transform_4, window_bounds = array<i64: 1, 128>}, {transform_indices = @transform_5, window_bounds = array<i64: 1, 128>}, {transform_indices = @transform_6, window_bounds = array<i64: 8, 128>}]} {
    %c0_i32 = arith.constant 0 : i32
    %0 = arith.cmpi eq, %arg2, %c0_i32 : i32
    %1 = arith.extui %0 : i1 to i32
    %c0_i32_0 = arith.constant 0 : i32
    %2 = arith.cmpi ne, %1, %c0_i32_0 : i32
    scf.if %2 {
      %cst_15 = arith.constant 0.000000e+00 : f32
      %25 = vector.broadcast %cst_15 : f32 to vector<8x128xf32>
      %c0_16 = arith.constant 0 : index
      %c0_17 = arith.constant 0 : index
      %26 = vector.load %arg9[%c0_16, %c0_17] : memref<8x128xf32, #tpu.memory_space<vmem>>, vector<8x128xf32>
      tpu.vector_store %arg9[%c0_16, %c0_17], %25 {strides = array<i32>} : memref<8x128xf32, #tpu.memory_space<vmem>>, vector<8x128xf32>,
    } else {
    }
    %c128_i32 = arith.constant 128 : i32
    %3 = arith.muli %arg2, %c128_i32 : i32
    %4 = tpu.assume_multiple %3, 128 : i32
    %c0 = arith.constant 0 : index
    %5 = arith.index_cast %4 : i32 to index
    %6 = vector.load %arg3[%c0, %5] : memref<8x128xf32, #tpu.memory_space<vmem>>, vector<8x128xf32>
    %c0_1 = arith.constant 0 : index
    %c0_2 = arith.constant 0 : index
    %7 = vector.load %arg5[%c0_1, %c0_2] : memref<128x128xf32, #tpu.memory_space<vmem>>, vector<128x128xf32>
    %cst = arith.constant dense<0.000000e+00> : vector<8x128xf32>
    %8 = tpu.matmul %6, %7, %cst {dimension_numbers = #tpu.dot_dimension_numbers<[1], [1], [0], [0], [0, 0, 1, 0], [], []>} : vector<8x128xf32>, vector<128x128xf32>, vector<8x128xf32> -> vector<8x128xf32>
    %c0_3 = arith.constant 0 : index
    %9 = arith.index_cast %4 : i32 to index
    %10 = vector.load %arg4[%c0_3, %9] : memref<1x128xf32, #tpu.memory_space<vmem>>, vector<1x128xf32>
    %11 = vector.broadcast %10 : vector<1x128xf32> to vector<8x128xf32>
    %12 = arith.mulf %6, %11 : vector<8x128xf32>
    %c0_4 = arith.constant 0 : index
    %c0_5 = arith.constant 0 : index
    %13 = vector.load %arg7[%c0_4, %c0_5] : memref<1x128xf32, #tpu.memory_space<vmem>>, vector<1x128xf32>
    %c0_6 = arith.constant 0 : index
    %c0_7 = arith.constant 0 : index
    %14 = vector.load %arg6[%c0_6, %c0_7] : memref<128x128xf32, #tpu.memory_space<vmem>>, vector<128x128xf32>
    %cst_8 = arith.constant dense<0.000000e+00> : vector<8x128xf32>
    %15 = tpu.matmul %12, %14, %cst_8 {dimension_numbers = #tpu.dot_dimension_numbers<[1], [1], [0], [0], [0, 0, 1, 0], [], []>} : vector<8x128xf32>, vector<128x128xf32>, vector<8x128xf32> -> vector<8x128xf32>
    %16 = vector.broadcast %13 : vector<1x128xf32> to vector<8x128xf32>
    %17 = arith.mulf %16, %15 : vector<8x128xf32>
    %18 = arith.addf %8, %17 : vector<8x128xf32>
    %c0_9 = arith.constant 0 : index
    %c0_10 = arith.constant 0 : index
    %19 = vector.load %arg9[%c0_9, %c0_10] : memref<8x128xf32, #tpu.memory_space<vmem>>, vector<8x128xf32>
    %20 = arith.addf %19, %18 : vector<8x128xf32>
    %c0_11 = arith.constant 0 : index
    %c0_12 = arith.constant 0 : index
    %21 = vector.load %arg9[%c0_11, %c0_12] : memref<8x128xf32, #tpu.memory_space<vmem>>, vector<8x128xf32>
    tpu.vector_store %arg9[%c0_11, %c0_12], %20 {strides = array<i32>} : memref<8x128xf32, #tpu.memory_space<vmem>>, vector<8x128xf32>,
    %c0_i32_13 = arith.constant 0 : i32
    %22 = arith.cmpi eq, %arg2, %c0_i32_13 : i32
    %23 = arith.extui %22 : i1 to i32
    %c0_i32_14 = arith.constant 0 : i32
    %24 = arith.cmpi ne, %23, %c0_i32_14 : i32
    scf.if %24 {
      %c0_15 = arith.constant 0 : index
      %c0_16 = arith.constant 0 : index
      %25 = vector.load %arg9[%c0_15, %c0_16] : memref<8x128xf32, #tpu.memory_space<vmem>>, vector<8x128xf32>
      %c0_17 = arith.constant 0 : index
      %c0_18 = arith.constant 0 : index
      %26 = vector.load %arg8[%c0_17, %c0_18] : memref<1x128xf32, #tpu.memory_space<vmem>>, vector<1x128xf32>
      %27 = vector.broadcast %26 : vector<1x128xf32> to vector<8x128xf32>
      %28 = arith.addf %25, %27 : vector<8x128xf32>
      %c0_19 = arith.constant 0 : index
      %c0_20 = arith.constant 0 : index
      %29 = vector.load %arg9[%c0_19, %c0_20] : memref<8x128xf32, #tpu.memory_space<vmem>>, vector<8x128xf32>
      tpu.vector_store %arg9[%c0_19, %c0_20], %28 {strides = array<i32>} : memref<8x128xf32, #tpu.memory_space<vmem>>, vector<8x128xf32>,
    } else {
    }
    return
  }
  func.func @transform_0(%arg0: i32, %arg1: i32, %arg2: i32) -> (i32, i32) {
    %c0_i32 = arith.constant 0 : i32
    %c0_i32_0 = arith.constant 0 : i32
    return %arg0, %c0_i32 : i32, i32
  }
  func.func @transform_1(%arg0: i32, %arg1: i32, %arg2: i32) -> (i32, i32) {
    %c0_i32 = arith.constant 0 : i32
    %c0_i32_0 = arith.constant 0 : i32
    %c0_i32_1 = arith.constant 0 : i32
    return %c0_i32, %c0_i32_0 : i32, i32
  }
  func.func @transform_2(%arg0: i32, %arg1: i32, %arg2: i32) -> (i32, i32) {
    %c0_i32 = arith.constant 0 : i32
    return %arg1, %arg2 : i32, i32
  }
  func.func @transform_3(%arg0: i32, %arg1: i32, %arg2: i32) -> (i32, i32) {
    %c0_i32 = arith.constant 0 : i32
    return %arg1, %arg2 : i32, i32
  }
  func.func @transform_4(%arg0: i32, %arg1: i32, %arg2: i32) -> (i32, i32) {
    %c0_i32 = arith.constant 0 : i32
    %c0_i32_0 = arith.constant 0 : i32
    return %c0_i32, %arg1 : i32, i32
  }
  func.func @transform_5(%arg0: i32, %arg1: i32, %arg2: i32) -> (i32, i32) {
    %c0_i32 = arith.constant 0 : i32
    %c0_i32_0 = arith.constant 0 : i32
    return %c0_i32, %arg1 : i32, i32
  }
  func.func @transform_6(%arg0: i32, %arg1: i32, %arg2: i32) -> (i32, i32) {
    %c0_i32 = arith.constant 0 : i32
    return %arg0, %arg1 : i32, i32
  }
}

</mosaic_0001>

<bundles_post_ra>
// kernel: tpu_custom_call.1
= control target key start
LH: loop header
LB: loop body
LE: loop exit
PB: predicated region body
PF: predicated region fallthrough
CT: control target
= control target key end

     0   :  { %11 = vsyncpa [#allocation3], 0  ;;  %s595_s0 = inlined_call_operand.hbm [shape: f32[8,128], index: 0, kind: input, shape index: {}]   ;;  %s596_s1 = inlined_call_operand.vmem [shape: f32[1,128], index: 1, kind: input, shape index: {}]   ;;  %s597_s2 = inlined_call_operand.hbm [shape: f32[128,128], index: 2, kind: input, shape index: {}]   ;;  %s598_s3 = inlined_call_operand.hbm [shape: f32[128,128], index: 3, kind: input, shape index: {}]   ;;  %s599_s4 = inlined_call_operand.vmem [shape: f32[1,128], index: 4, kind: input, shape index: {}]   ;;  %s600_s5 = inlined_call_operand.vmem [shape: f32[1,128], index: 5, kind: input, shape index: {}]   ;;  %s601_s6 = inlined_call_operand.hbm [shape: f32[8,128], index: 6, kind: output, shape index: {}]  }
   0x1   :  { %12 = vsyncpa [#allocation6], 0 }
   0x2   :  { %13 = vsyncpa [#allocation4], 0  ;;  %s497_s21 = smov [#allocation5]  }
   0x3   :  { %s31_s22 = sshll.u32 %s497_s21, 4  ;;  %s32_s22 = int_to_ptr.vmem [resolvable:$true] %s31_s22 }
   0x4   :  { %s419_s23 = scalar_lea.vmem %s32_s22, 2048  ;;  %p424_p1 = scmp.lt.s32.totalorder %s32_s22, %s32_s22 }
   0x5   :  { %p420_p0 = scmp.ne.s32.totalorder %s32_s22, %s419_s23  ;;  %p425_p2 = scmp.lt.s32.totalorder %s419_s23, %s419_s23 }
   0x7   :  { %p426_p3 = por %p425_p2, %p424_p1 }
   0x9   :  { %p427_p4 = pnand %p426_p3, %p420_p0 }
   0xb   :  { %430 = shalt.err (!%p427_p4)
}
   0xc   :  { %s498_s24 = smov 128   ;;  %s499_s25 = smov 8  }
   0xd   :  { %37 = dma.hbm_to_vmem [thread:$0]  %s597_s2, 2048, %s32_s22, [#allocation6], %s498_s24, %s498_s24, %s499_s25  }
   0xe   :  { %s500_s28 = smov [#allocation2]   ;;  %s501_s30 = smov [#allocation7]  }
   0xf   :  { %s20_s29 = sshll.u32 %s500_s28, 4  ;;  %s43_s7 = sshll.u32 %s501_s30, 4  ;;  %s21_s29 = int_to_ptr.vmem [resolvable:$true] %s20_s29  ;;  %s44_s7 = int_to_ptr.vmem [resolvable:$true] %s43_s7 }
  0x10   :  { %s439_s8 = scalar_lea.vmem %s21_s29, 128  ;;  %p444_p6 = scmp.lt.s32.totalorder %s21_s29, %s21_s29 }
  0x11   :  { %p440_p5 = scmp.ne.s32.totalorder %s21_s29, %s439_s8  ;;  %p445_p7 = scmp.lt.s32.totalorder %s439_s8, %s439_s8 }
  0x13   :  { %p446_p8 = por %p445_p7, %p444_p6 }
  0x15   :  { %p447_p9 = pnand %p446_p8, %p440_p5 }
  0x17   :  { %450 = shalt.err (!%p447_p9)
}
  0x18   :  { %23 = dma.hbm_to_vmem [thread:$0]  %s595_s0, 128, %s21_s29, [#allocation3]  }
  0x19   :  { %s459_s11 = scalar_lea.vmem %s44_s7, 2048  ;;  %p464_p11 = scmp.lt.s32.totalorder %s44_s7, %s44_s7 }
  0x1a   :  { %p460_p10 = scmp.ne.s32.totalorder %s44_s7, %s459_s11  ;;  %p465_p12 = scmp.lt.s32.totalorder %s459_s11, %s459_s11 }
  0x1c   :  { %p466_p13 = por %p465_p12, %p464_p11 }
  0x1e   :  { %p467_p0 = pnand %p466_p13, %p460_p10 }
  0x20   :  { %470 = shalt.err (!%p467_p0)
}
  0x21   :  { %49 = dma.hbm_to_vmem [thread:$0]  %s598_s3, 2048, %s44_s7, [#allocation6], %s498_s24, %s498_s24, %s499_s25  }
  0x22   :  { %491 = dma.done.wait [#allocation3], 128  }
  0x23   :  { %492 = vsyncadd [#allocation3], 4294967168 }
  0x24   :  { %493 = dma.done.wait [#allocation6], 4096  }
  0x25   :  { %494 = vsyncadd [#allocation6], 4294963200  ;;  %v502_v0 = vmov 0.0   ;;  %vm503_vm0 = vmmov 0   ;;  %v114_v1 = vld [vmem:[#allocation7 + $0x78] sm:$0xff]  ;;  %v113_v3 = vld [vmem:[#allocation7 + $0x70] sm:$0xff] }
  0x26   :  { %333 = vmatprep.subr.mxu0 %v502_v0  ;;  %368 = vmatprep.subr.mxu1 %v502_v0  ;;  %v88_v2 = vld [vmem:[#allocation5 + $0x78] sm:$0xff]  ;;  %v87_v4 = vld [vmem:[#allocation5 + $0x70] sm:$0xff]  ;;  %v112_v5 = vld [vmem:[#allocation7 + $0x68] sm:$0xff]  ;;  %s504_s16 = smov [#allocation8]  }
  0x27   :  { %365 = vmatprep.mubr.msk.f32.mxu0 %vm503_vm0, %v502_v0  ;;  %400 = vmatprep.mubr.msk.f32.mxu1 %vm503_vm0, %v502_v0  ;;  %v86_v6 = vld [vmem:[#allocation5 + $0x68] sm:$0xff]  ;;  %v111_v7 = vld [vmem:[#allocation7 + $0x60] sm:$0xff]  ;;  %v110_v9 = vld [vmem:[#allocation7 + $0x58] sm:$0xff]  ;;  %s284_s17 = sshll.u32 %s504_s16, 4  ;;  %s285_s17 = int_to_ptr.vmem [resolvable:$true] %s284_s17 }
  0x28   :  { %334 = vmatpush3.xpose.msra.mxu0 %v114_v1  ;;  %369 = vmatpush3.xpose.msra.mxu1 %v88_v2  ;;  %v85_v8 = vld [vmem:[#allocation5 + $0x60] sm:$0xff]  ;;  %v84_v10 = vld [vmem:[#allocation5 + $0x58] sm:$0xff]  ;;  %v109_v11 = vld [vmem:[#allocation7 + $0x50] sm:$0xff]  ;;  %s471_s18 = scalar_lea.vmem %s285_s17, 128  ;;  %p476_p2 = scmp.lt.s32.totalorder %s285_s17, %s285_s17 }
  0x29   :  { %335 = vmatprep.subr.mxu0 %v502_v0  ;;  %370 = vmatprep.subr.mxu1 %v502_v0  ;;  %v83_v12 = vld [vmem:[#allocation5 + $0x50] sm:$0xff]  ;;  %v108_v13 = vld [vmem:[#allocation7 + $0x48] sm:$0xff]  ;;  %v107_v15 = vld [vmem:[#allocation7 + $0x40] sm:$0xff]  ;;  %p472_p1 = scmp.ne.s32.totalorder %s285_s17, %s471_s18  ;;  %p477_p3 = scmp.lt.s32.totalorder %s471_s18, %s471_s18 }
  0x2a   :  { %v82_v14 = vld [vmem:[#allocation5 + $0x48] sm:$0xff]  ;;  %v81_v16 = vld [vmem:[#allocation5 + $0x40] sm:$0xff]  ;;  %v106_v17 = vld [vmem:[#allocation7 + $0x38] sm:$0xff] }
  0x2b   :  { %v80_v18 = vld [vmem:[#allocation5 + $0x38] sm:$0xff]  ;;  %v105_v19 = vld [vmem:[#allocation7 + $0x30] sm:$0xff]  ;;  %v104_v21 = vld [vmem:[#allocation7 + $0x28] sm:$0xff]  ;;  %p478_p4 = por %p477_p3, %p476_p2 }
  0x2c   :  { %336 = vmatpush3.xpose.msra.mxu0 %v113_v3  ;;  %371 = vmatpush3.xpose.msra.mxu1 %v87_v4  ;;  %v79_v20 = vld [vmem:[#allocation5 + $0x30] sm:$0xff]  ;;  %v78_v22 = vld [vmem:[#allocation5 + $0x28] sm:$0xff]  ;;  %v103_v23 = vld [vmem:[#allocation7 + $0x20] sm:$0xff] }
  0x2d   :  { %337 = vmatprep.subr.mxu0 %v502_v0  ;;  %372 = vmatprep.subr.mxu1 %v502_v0  ;;  %v77_v24 = vld [vmem:[#allocation5 + $0x20] sm:$0xff]  ;;  %v102_v25 = vld [vmem:[#allocation7 + $0x18] sm:$0xff]  ;;  %v101_v27 = vld [vmem:[#allocation7 + $0x10] sm:$0xff]  ;;  %p479_p5 = pnand %p478_p4, %p472_p1 }
  0x2e   :  { %v76_v26 = vld [vmem:[#allocation5 + $0x18] sm:$0xff]  ;;  %v75_v28 = vld [vmem:[#allocation5 + $0x10] sm:$0xff]  ;;  %v100_v29 = vld [vmem:[#allocation7 + $0x8] sm:$0xff] }
  0x2f   :  { %v74_v30 = vld [vmem:[#allocation5 + $0x8] sm:$0xff]  ;;  %v72_v31 = vld [vmem:[#allocation2] sm:$0xff]  ;;  %v99_v33 = vld [vmem:[#allocation7] sm:$0xff] }
  0x30   :  { %338 = vmatpush3.xpose.msra.mxu0 %v112_v5  ;;  %373 = vmatpush3.xpose.msra.mxu1 %v86_v6  ;;  %v296_v32 = vld [vmem:[%s596_s1] ss:$0 sm:$0xff]  ;;  %v73_v34 = vld [vmem:[#allocation5] sm:$0xff] }
  0x31   :  { %339 = vmatprep.subr.mxu0 %v502_v0  ;;  %374 = vmatprep.subr.mxu1 %v502_v0  ;;  %v97_v35 = vmul.f32 %v296_v32, %v72_v31  ;;  %v297_v36 = vld [vmem:[%s599_s4] ss:$0 sm:$0xff] }
  0x32   :  { %v298_v43 = vld [vmem:[%s600_s5] ss:$0 sm:$0xff] }
  0x34   :  { %340 = vmatpush3.xpose.msra.mxu0 %v111_v7  ;;  %375 = vmatpush3.xpose.msra.mxu1 %v85_v8 }
  0x35   :  { %341 = vmatprep.subr.mxu0 %v502_v0  ;;  %376 = vmatprep.subr.mxu1 %v502_v0 }
  0x38   :  { %342 = vmatpush3.xpose.msra.mxu0 %v110_v9  ;;  %377 = vmatpush3.xpose.msra.mxu1 %v84_v10 }
  0x39   :  { %343 = vmatprep.subr.mxu0 %v502_v0  ;;  %378 = vmatprep.subr.mxu1 %v502_v0 }
  0x3c   :  { %344 = vmatpush3.xpose.msra.mxu0 %v109_v11  ;;  %379 = vmatpush3.xpose.msra.mxu1 %v83_v12 }
  0x3d   :  { %345 = vmatprep.subr.mxu0 %v502_v0  ;;  %380 = vmatprep.subr.mxu1 %v502_v0 }
  0x40   :  { %346 = vmatpush3.xpose.msra.mxu0 %v108_v13  ;;  %381 = vmatpush3.xpose.msra.mxu1 %v82_v14 }
  0x41   :  { %347 = vmatprep.subr.mxu0 %v502_v0  ;;  %382 = vmatprep.subr.mxu1 %v502_v0 }
  0x44   :  { %348 = vmatpush3.xpose.msra.mxu0 %v107_v15  ;;  %383 = vmatpush3.xpose.msra.mxu1 %v81_v16 }
  0x45   :  { %349 = vmatprep.subr.mxu0 %v502_v0  ;;  %384 = vmatprep.subr.mxu1 %v502_v0 }
  0x48   :  { %350 = vmatpush3.xpose.msra.mxu0 %v106_v17  ;;  %385 = vmatpush3.xpose.msra.mxu1 %v80_v18 }
  0x49   :  { %351 = vmatprep.subr.mxu0 %v502_v0  ;;  %386 = vmatprep.subr.mxu1 %v502_v0 }
  0x4c   :  { %352 = vmatpush3.xpose.msra.mxu0 %v105_v19  ;;  %387 = vmatpush3.xpose.msra.mxu1 %v79_v20 }
  0x4d   :  { %353 = vmatprep.subr.mxu0 %v502_v0  ;;  %388 = vmatprep.subr.mxu1 %v502_v0 }
  0x50   :  { %354 = vmatpush3.xpose.msra.mxu0 %v104_v21  ;;  %389 = vmatpush3.xpose.msra.mxu1 %v78_v22 }
  0x51   :  { %355 = vmatprep.subr.mxu0 %v502_v0  ;;  %390 = vmatprep.subr.mxu1 %v502_v0 }
  0x54   :  { %356 = vmatpush3.xpose.msra.mxu0 %v103_v23  ;;  %391 = vmatpush3.xpose.msra.mxu1 %v77_v24 }
  0x55   :  { %357 = vmatprep.subr.mxu0 %v502_v0  ;;  %392 = vmatprep.subr.mxu1 %v502_v0 }
  0x58   :  { %358 = vmatpush3.xpose.msra.mxu0 %v102_v25  ;;  %393 = vmatpush3.xpose.msra.mxu1 %v76_v26 }
  0x59   :  { %359 = vmatprep.subr.mxu0 %v502_v0  ;;  %394 = vmatprep.subr.mxu1 %v502_v0 }
  0x5c   :  { %360 = vmatpush3.xpose.msra.mxu0 %v101_v27  ;;  %395 = vmatpush3.xpose.msra.mxu1 %v75_v28 }
  0x5d   :  { %361 = vmatprep.subr.mxu0 %v502_v0  ;;  %396 = vmatprep.subr.mxu1 %v502_v0 }
  0x60   :  { %362 = vmatpush3.xpose.msra.mxu0 %v100_v29  ;;  %397 = vmatpush3.xpose.msra.mxu1 %v74_v30 }
  0x61   :  { %363 = vmatprep.subr.mxu0 %v502_v0  ;;  %398 = vmatprep.subr.mxu1 %v502_v0 }
  0x64   :  { %364 = vmatpush3.xpose.msra.mxu0 %v99_v33  ;;  %399 = vmatpush3.xpose.msra.mxu1 %v73_v34 }
  0x67   :  { %366 = vmatmul.mubr.f32.vlgmr.msra.gmra.mxu0 %v97_v35  ;;  %401 = vmatmul.mubr.f32.vlgmr.msra.gmra.mxu1 %v72_v31 }
 0x127   :  { %v181_v37 = vpop.f32.mrf.mxu0  ;;  %v258_v38 = vpop.f32.mrf.mxu1 }
 0x128   :  { %v191_v39 = vmul.f32 %v297_v36, %v181_v37 }
 0x129   :  { %v367_v40 = vpop.f32.mrf.mxu0  ;;  %v402_v41 = vpop.f32.mrf.mxu1 }
 0x12a   :  { %v259_v42 = vadd.f32 %v258_v38, %v191_v39 }
 0x12c   :  { %v276_v44 = vadd.f32 %v298_v43, %v259_v42 }
 0x12e   :  { %277 = vst [vmem:[#allocation8] sm:$0xff] %v276_v44 }
 0x12f   :  { %482 = shalt.err (!%p479_p5)
}
 0x130   :  { %287 = dma.vmem_to_hbm [thread:$0]  %s285_s17, 128, %s601_s6, [#allocation4]  }
 0x131   :  { %495 = dma.done.wait [#allocation4], 128  }
 0x132   :  { %496 = vsyncadd [#allocation4], 4294967168 }
 0x133   :  { %291 = vsyncpa [#allocation3], 1 }
 0x134   :  { %292 = vsyncpa [#allocation6], 1 }
 0x135   :  { %293 = vsyncpa [#allocation4], 1 }

</bundles_post_ra>
